<compile_context>
chip_gen: v7x
topology: tpu7x:2x2x1
jax: 0.10.0
libtpu: 0.0.40
codegen_flags: <defaults>
</compile_context>

<pallas_src>
import jax
import jax.numpy as jnp
from jax.experimental import pallas as pl
from jax.experimental.pallas import tpu as pltpu


def _tokenizer_kernel(ids_ref, tbl_ref, pe_ref, out_ref):
    # ids_ref: VMEM (N, 1) int32  -- flattened token ids (N = B*S)
    # tbl_ref: VMEM (V, D) f32    -- full embedding table
    # pe_ref : VMEM (N, D) f32    -- precomputed positional encoding, tiled over batch
    # out_ref: VMEM (N, D) f32
    N, D = out_ref.shape
    V = tbl_ref.shape[0]

    # Vectorized gather: exact one-hot matmul on the MXU (0/1 weights are exact).
    vocab_iota = jax.lax.broadcasted_iota(jnp.int32, (N, V), 1)
    onehot = (vocab_iota == ids_ref[...]).astype(jnp.float32)        # (N, V)
    gathered = jnp.dot(onehot, tbl_ref[...],
                       preferred_element_type=jnp.float32)           # (N, D)

    # Single full-tile store.
    out_ref[...] = gathered + pe_ref[...]


def _positional_encoding(seq_len: int, d_model: int) -> jax.Array:
    # Mirrors PositionalEncoding.forward() exactly (float32 throughout).
    even_i = jnp.arange(0, d_model, 2, dtype=jnp.float32)
    denominator = jnp.power(10000.0, even_i / d_model)
    position = jnp.arange(seq_len, dtype=jnp.float32).reshape(seq_len, 1)
    even_pe = jnp.sin(position / denominator)
    odd_pe = jnp.cos(position / denominator)
    return jnp.stack([even_pe, odd_pe], axis=-1).reshape(seq_len, d_model)


def tokenizer_forward(batch_ids: jax.Array, emb_table: jax.Array) -> jax.Array:
    """Pallas equivalent of Tokenizer.forward(batch): embedding(batch) + PositionalEncoding()."""
    B, S = batch_ids.shape
    V, D = emb_table.shape
    N = B * S

    # Constant-fold PE outside the kernel; tile over batch so the kernel does one add.
    pe = _positional_encoding(S, D)                                  # (S, D)
    pe_full = jnp.tile(pe, (B, 1)).astype(jnp.float32)               # (N, D)

    ids_flat = batch_ids.reshape(N, 1).astype(jnp.int32)             # (N, 1)
    table = emb_table.astype(jnp.float32)

    grid_spec = pl.GridSpec(
        grid=(1,),                                                   # single invocation: B=2 grid is pure overhead
        in_specs=[
            pl.BlockSpec((N, 1), lambda i: (0, 0)),                  # ids, full block
            pl.BlockSpec((V, D), lambda i: (0, 0)),                  # embedding table, VMEM resident
            pl.BlockSpec((N, D), lambda i: (0, 0)),                  # PE table
        ],
        out_specs=pl.BlockSpec((N, D), lambda i: (0, 0)),
    )
    # TODO(synk): if V*D ever grows beyond a few MiB (e.g. real vocab on v7x's 64 MiB VMEM),
    # switch the table to memory_space=pl.ANY + manual row DMA keyed off prefetched ids.
    out_flat = pl.pallas_call(
        _tokenizer_kernel,
        grid_spec=grid_spec,
        out_shape=jax.ShapeDtypeStruct((N, D), jnp.float32),
        compiler_params=pltpu.CompilerParams(dimension_semantics=("arbitrary",)),
    )(ids_flat, table, pe_full)

    return out_flat.reshape(B, S, D)


def _reference(batch_ids: jax.Array, emb_table: jax.Array) -> jax.Array:
    # Pure-JAX mirror of the PyTorch forward.
    _, S = batch_ids.shape
    _, D = emb_table.shape
    pe = _positional_encoding(S, D)
    return emb_table[batch_ids] + pe[None, :, :]


if __name__ == "__main__":
    key = jax.random.PRNGKey(0)
    k_emb, k_ids = jax.random.split(key)

    vocab_size, d_model, max_seq_len, batch = 32, 16, 19, 2   # module: d_model=16, max_seq_len=19

    emb_table = jax.random.normal(k_emb, (vocab_size, d_model), dtype=jnp.float32)
    batch_ids = jax.random.randint(k_ids, (batch, max_seq_len), 0, vocab_size, dtype=jnp.int32)

    out = tokenizer_forward(batch_ids, emb_table)
    out = jax.block_until_ready(out)

    ref = _reference(batch_ids, emb_table)
    assert out.shape == (batch, max_seq_len, d_model)
    assert out.dtype == jnp.float32
    assert jnp.allclose(out, ref, atol=2e-5, rtol=1e-5), "mismatch vs reference"

    print("KERNEL_OK")
</pallas_src>

<mosaic_0001>
module attributes {stable_mosaic.version = 11 : i64} {
  func.func @_tokenizer_kernel(%arg0: i32, %arg1: memref<38x1xi32, #tpu.memory_space<vmem>>, %arg2: memref<32x16xf32, #tpu.memory_space<vmem>>, %arg3: memref<38x16xf32, #tpu.memory_space<vmem>>, %arg4: memref<38x16xf32, #tpu.memory_space<vmem>>) attributes {dimension_semantics = [#tpu.dimension_semantics<arbitrary>], iteration_bounds = array<i64: 1>, scalar_prefetch = 0 : i64, scratch_operands = 0 : i64, tpu.core_type = #tpu.core_type<tc>, window_params = [{pipeline_mode = #tpu.pipeline_mode<synchronous>, transform_indices = @transform_0, window_bounds = array<i64: 38, 1>}, {pipeline_mode = #tpu.pipeline_mode<synchronous>, transform_indices = @transform_1, window_bounds = array<i64: 32, 16>}, {pipeline_mode = #tpu.pipeline_mode<synchronous>, transform_indices = @transform_2, window_bounds = array<i64: 38, 16>}, {pipeline_mode = #tpu.pipeline_mode<synchronous>, transform_indices = @transform_3, window_bounds = array<i64: 38, 16>}]} {
    %0 = tpu.iota {dimensions = array<i32: 1>} : vector<38x32xi32>
    %c0 = arith.constant 0 : index
    %c0_0 = arith.constant 0 : index
    %1 = vector.load %arg1[%c0, %c0_0] : memref<38x1xi32, #tpu.memory_space<vmem>>, vector<38x1xi32>
    %2 = vector.broadcast %1 : vector<38x1xi32> to vector<38x32xi32>
    %3 = arith.cmpi eq, %0, %2 : vector<38x32xi32>
    %4 = arith.extui %3 : vector<38x32xi1> to vector<38x32xi32>
    %5 = arith.sitofp %4 : vector<38x32xi32> to vector<38x32xf32>
    %c0_1 = arith.constant 0 : index
    %c0_2 = arith.constant 0 : index
    %6 = vector.load %arg2[%c0_1, %c0_2] : memref<32x16xf32, #tpu.memory_space<vmem>>, vector<32x16xf32>
    %cst = arith.constant dense<0.000000e+00> : vector<38x16xf32>
    %7 = tpu.matmul %5, %6, %cst {dimension_numbers = #tpu.dot_dimension_numbers<[1], [0], [0], [1], [0, 0, 1, 1], [], []>} : vector<38x32xf32>, vector<32x16xf32>, vector<38x16xf32> -> vector<38x16xf32>
    %c0_3 = arith.constant 0 : index
    %c0_4 = arith.constant 0 : index
    %8 = vector.load %arg3[%c0_3, %c0_4] : memref<38x16xf32, #tpu.memory_space<vmem>>, vector<38x16xf32>
    %9 = arith.addf %7, %8 : vector<38x16xf32>
    %c0_5 = arith.constant 0 : index
    %c0_6 = arith.constant 0 : index
    %10 = vector.load %arg4[%c0_5, %c0_6] : memref<38x16xf32, #tpu.memory_space<vmem>>, vector<38x16xf32>
    tpu.vector_store %arg4[%c0_5, %c0_6], %9 {strides = array<i32>} : memref<38x16xf32, #tpu.memory_space<vmem>>, vector<38x16xf32>,
    return
  }
  func.func @transform_0(%arg0: i32) -> (i32, i32) {
    %c0_i32 = arith.constant 0 : i32
    %c0_i32_0 = arith.constant 0 : i32
    %c0_i32_1 = arith.constant 0 : i32
    return %c0_i32, %c0_i32_0 : i32, i32
  }
  func.func @transform_1(%arg0: i32) -> (i32, i32) {
    %c0_i32 = arith.constant 0 : i32
    %c0_i32_0 = arith.constant 0 : i32
    %c0_i32_1 = arith.constant 0 : i32
    return %c0_i32, %c0_i32_0 : i32, i32
  }
  func.func @transform_2(%arg0: i32) -> (i32, i32) {
    %c0_i32 = arith.constant 0 : i32
    %c0_i32_0 = arith.constant 0 : i32
    %c0_i32_1 = arith.constant 0 : i32
    return %c0_i32, %c0_i32_0 : i32, i32
  }
  func.func @transform_3(%arg0: i32) -> (i32, i32) {
    %c0_i32 = arith.constant 0 : i32
    %c0_i32_0 = arith.constant 0 : i32
    %c0_i32_1 = arith.constant 0 : i32
    return %c0_i32, %c0_i32_0 : i32, i32
  }
}

</mosaic_0001>

<bundles_post_ra>
// kernel: tpu_custom_call.1
= control target key start
LH: loop header
LB: loop body
LE: loop exit
PB: predicated region body
PF: predicated region fallthrough
CT: control target
= control target key end

     0   :  { %v235_v0 = vmov 0   ;;  %v236_v6 = vmov 0.0|0.0   ;;  %vm237_vm0 = vmmov 0   ;;  %v238_v11 = vmov 0.0   ;;  %s330_s0 = inlined_call_operand.vmem [shape: s32[38,1], index: 0, kind: input, shape index: {}]   ;;  %s331_s1 = inlined_call_operand.vmem [shape: f32[32,16], index: 1, kind: input, shape index: {}]   ;;  %s332_s2 = inlined_call_operand.vmem [shape: f32[38,16], index: 2, kind: input, shape index: {}]   ;;  %s333_s3 = inlined_call_operand.vmem [shape: f32[38,16], index: 3, kind: output, shape index: {}]  }
   0x1   :  { %234 = vset.pattern.permute.xlu1 %v235_v0  ;;  %233 = vset.pattern.permute.xlu0 %v235_v0  ;;  %v19_v1 = vld [vmem:[%s330_s0 + $0x18] sm:$0xff]  ;;  %v16_v2 = vld [vmem:[%s330_s0] sm:$0xff]  ;;  %v18_v4 = vld [vmem:[%s330_s0 + $0x10] sm:$0xff]  ;;  %v14_v14 = vlaneseq  ;;  %vm60_vm1 = vcmask 261120   ;;  %vm166_vm7 = vcmask 130048   ;;  %vm171_vm8 = vcmask 128000  }
   0x2   :  { %31 = vperm.xlu1 %234, %v19_v1   ;;  %22 = vperm.xlu0 %233, %v16_v2   ;;  %v51_v3 = vld [vmem:[%s331_s1] sm:$0xff]  ;;  %v17_v5 = vld [vmem:[%s330_s0 + $0x8] sm:$0xff]  ;;  %v53_v9 = vld [vmem:[%s331_s1 + $0x10] sm:$0xff] }
   0x3   :  { %219 = vmatprep.subr.bf16.mxu0 %v236_v6  ;;  %v52_v7 = vld [vmem:[%s331_s1 + $0x8] sm:$0xff]  ;;  %225 = vmatprep.subr.bf16.mxu1 %v236_v6  ;;  %v54_v10 = vld [vmem:[%s331_s1 + $0x18] sm:$0xff]  ;;  %v20_v12 = vld [vmem:[%s330_s0 + $0x20] sm:$0x3f]  ;;  %v15_v15 = vand.u32 127, %v14_v14 }
   0x4   :  { %v220_v8 = vpack.c.bf16 %v52_v7, %v51_v3  ;;  %204 = vmatprep.mubr.msk.f32.mxu0 %vm237_vm0, %v238_v11  ;;  %213 = vmatprep.mubr.msk.f32.mxu1 %vm237_vm0, %v238_v11  ;;  %v223_v13 = vpack.c.bf16 %v54_v10, %v53_v9  ;;  %v55_v26 = vld [vmem:[%s332_s2] sm:$0xff]  ;;  %v58_v27 = vld [vmem:[%s332_s2 + $0x18] sm:$0xff]  ;;  %v56_v34 = vld [vmem:[%s332_s2 + $0x8] sm:$0xff] }
   0x5   :  { %v57_v38 = vld [vmem:[%s332_s2 + $0x10] sm:$0xff]  ;;  %v59_v39 = vld [vmem:[%s332_s2 + $0x20] sm:$0x3f] }
   0x6   :  { %28 = vperm.xlu1 %234, %v18_v4   ;;  %25 = vperm.xlu0 %233, %v17_v5  }
   0x7   :  { %221 = vmatpush3.bf16.msra.mxu0 %v220_v8  ;;  %227 = vmatpush3.bf16.msra.mxu1 %v220_v8 }
   0x8   :  { %222 = vmatprep.subr.bf16.mxu0 %v236_v6  ;;  %226 = vmatprep.subr.bf16.mxu1 %v236_v6 }
   0xa   :  { %34 = vperm.xlu0 %233, %v20_v12  }
   0xb   :  { %224 = vmatpush3.bf16.msra.mxu0 %v223_v13  ;;  %228 = vmatpush3.bf16.msra.mxu1 %v223_v13 }
  0x81   :  { %v32_v16 = vpop.permute.xlu1 %31  ;;  %v23_v17 = vpop.permute.xlu0 %22 }
  0x82   :  { %vm39_vm2 = vcmp.eq.s32.totalorder %v15_v15, %v32_v16  ;;  %vm36_vm3 = vcmp.eq.s32.totalorder %v15_v15, %v23_v17 }
  0x83   :  { %v180_v18 = vsel %vm39_vm2, 1.0, %v238_v11  ;;  %v177_v19 = vsel %vm36_vm3, 1.0, %v238_v11 }
  0x84   :  { %205 = vmatmul.mubr.msk.f32.vlgmr.msra.gmra.mrb[0].mxu0 %vm60_vm1, %v177_v19  ;;  %214 = vmatmul.mubr.msk.f32.vlgmr.msra.gmra.mrb[0].mxu1 %vm60_vm1, %v180_v18 }
  0x85   :  { %v29_v20 = vpop.permute.xlu1 %28  ;;  %v26_v21 = vpop.permute.xlu0 %25  ;;  %207 = vmatprep.mubr.msk.f32.mxu0 %vm237_vm0, %v238_v11  ;;  %216 = vmatprep.mubr.msk.f32.mxu1 %vm237_vm0, %v238_v11 }
  0x86   :  { %vm37_vm4 = vcmp.eq.s32.totalorder %v15_v15, %v26_v21  ;;  %vm38_vm5 = vcmp.eq.s32.totalorder %v15_v15, %v29_v20 }
  0x87   :  { %v178_v22 = vsel %vm37_vm4, 1.0, %v238_v11  ;;  %v179_v24 = vsel %vm38_vm5, 1.0, %v238_v11 }
  0x88   :  { %208 = vmatmul.mubr.msk.f32.gmra.mrb[2].mxu0 %vm60_vm1, %v178_v22 }
  0x89   :  { %v35_v23 = vpop.permute.xlu0 %34  ;;  %210 = vmatprep.mubr.msk.f32.mxu0 %vm237_vm0, %v238_v11 }
  0x8a   :  { %vm40_vm6 = vcmp.eq.s32.totalorder %v15_v15, %v35_v23 }
  0x8b   :  { %v181_v25 = vsel %vm40_vm6, 1.0, %v238_v11 }
  0x8c   :  { %211 = vmatmul.mubr.msk.f32.gmra.mrb[4].mxu0 %vm60_vm1, %v179_v24  ;;  %217 = vmatmul.mubr.msk.f32.gmra.mrb[2].mxu1 %vm60_vm1, %v181_v25 }
 0x157   :  { %v142_v28 = vpop.f32.mrb[0].mxu0  ;;  %v157_v29 = vpop.f32.mrb[0].mxu1 }
 0x158   :  { %v143_v30 = vadd.f32 %v142_v28, %v55_v26  ;;  %v206_v31 = vpop.f32.mrb[1].mxu0  ;;  %v158_v32 = vadd.f32 %v157_v29, %v58_v27  ;;  %v215_v33 = vpop.f32.mrb[1].mxu1 }
 0x15a   :  { %167 = vst.msk [vmem:[%s333_s3] sm:$0xff] %vm166_vm7, %v143_v30  ;;  %170 = vst.msk [vmem:[%s333_s3 + $0x18] sm:$0xff] %vm166_vm7, %v158_v32 }
 0x15b   :  { %v147_v35 = vpop.f32.mrb[2].mxu0 }
 0x15c   :  { %v148_v36 = vadd.f32 %v147_v35, %v56_v34  ;;  %v209_v37 = vpop.f32.mrb[3].mxu0 }
 0x15e   :  { %168 = vst.msk [vmem:[%s333_s3 + $0x8] sm:$0xff] %vm166_vm7, %v148_v36 }
 0x15f   :  { %v152_v40 = vpop.f32.mrb[4].mxu0  ;;  %v162_v41 = vpop.f32.mrb[2].mxu1 }
 0x160   :  { %v153_v42 = vadd.f32 %v152_v40, %v57_v38  ;;  %v163_v43 = vadd.f32 %v162_v41, %v59_v39  ;;  %v212_v44 = vpop.f32.mrb[5].mxu0  ;;  %v218_v45 = vpop.f32.mrb[3].mxu1 }
 0x162   :  { %169 = vst.msk [vmem:[%s333_s3 + $0x10] sm:$0xff] %vm166_vm7, %v153_v42 }
 0x163   :  { %172 = vst.msk [vmem:[%s333_s3 + $0x20] sm:$0x3f] %vm171_vm8, %v163_v43 }

</bundles_post_ra>
